<compile_context>
chip_gen: v6e
topology: v6e:2x2x1
jax: 0.10.0
libtpu: 0.0.40
codegen_flags: <defaults>
</compile_context>

<pallas_src>
import functools

import jax
import jax.numpy as jnp
import numpy as np
from jax.experimental import pallas as pl
from jax.experimental.pallas import tpu as pltpu

EPSILON = float(np.finfo(np.float32).tiny)

_MAX_BLOCK_ROWS = 512          # >=512-row tiles already sit at the HBM roofline
_TARGET_GRID_STEPS = 8         # megacore balance + DMA/compute overlap
_VMEM_HEADROOM = 4 * 1024 * 1024


def _round_up(x: int, m: int) -> int:
    return ((x + m - 1) // m) * m


def _round_down(x: int, m: int) -> int:
    return (x // m) * m


def _vmem_budget_bytes() -> int:
    """Never request more than half the physical VMEM (<=32 MiB on v7x)."""
    cap = 64 * 1024 * 1024
    try:
        cap = int(getattr(pltpu.get_tpu_info(), "vmem_capacity_bytes", cap))
    except Exception:
        pass
    return min(cap // 2, 48 * 1024 * 1024)


def _row_reciprocal(denom):
    """EUP vrcp seed + one Newton step on the tiny (rows, 1) denominator.

    Keeps the reciprocal off the VALU slots (review) while restoring ~full f32
    precision, so the per-round normalization error stays ~1 ulp over k rounds.
    """
    inv = pl.reciprocal(denom, approx=True)
    return inv * (2.0 - denom * inv)


def _run_rounds(round_fn, state, k: int):
    # Small k: full unroll (LLO scheduler visibility).  Large k: fori_loop so
    # code size and live ranges stay bounded.
    if k <= 16:
        for _ in range(k):
            state = round_fn(state)
        return state
    return jax.lax.fori_loop(0, k, lambda _, s: round_fn(s), state)


def _subset_kernel(scores_ref, khot_ref, *, k: int, inv_tau: float,
                   tau_is_one: bool, chunk_rows: int, num_chunks: int):
    """One (block_rows, n) batch tile; k rounds over vreg-resident row chunks."""

    def process_chunk(c):
        r0 = c * chunk_rows
        if not isinstance(r0, int):
            r0 = pl.multiple_of(r0, chunk_rows)
        x = scores_ref[pl.ds(r0, chunk_rows), :].astype(jnp.float32)

        if tau_is_one:
            # softmax(s0 + sum_j log(mask_j)) == normalize(exp(s0-m0) * prod_j mask_j)
            # -> a single exp pass; per round only VALU multiplies + one XLU row sum.
            # Carrying the normalized weights keeps everything well-scaled.
            m0 = jnp.max(x, axis=-1, keepdims=True)
            w = jnp.exp(x - m0)
            khot = jnp.zeros_like(w)

            def round_fn(state):
                w, khot = state
                inv = _row_reciprocal(jnp.sum(w, axis=-1, keepdims=True))
                onehot = w * inv                       # this round's softmax
                khot = khot + onehot
                w = onehot * jnp.maximum(1.0 - onehot, EPSILON)
                return w, khot

            _, khot = _run_rounds(round_fn, (w, khot), k)
        else:
            # Faithful masked softmax per round.  Logits pre-scaled by 1/tau once;
            # each round adds log(mask)/tau.  The fresh per-round max is kept on
            # purpose (numerical faithfulness) -- the path is EUP-bound anyway
            # (exp + log per element per round), so the max rides the XLU slot.
            s = x * inv_tau
            khot = jnp.zeros_like(s)

            def round_fn(state):
                s, khot = state
                m = jnp.max(s, axis=-1, keepdims=True)
                e = jnp.exp(s - m)
                inv = _row_reciprocal(jnp.sum(e, axis=-1, keepdims=True))
                onehot = e * inv
                khot = khot + onehot
                s = s + jnp.log(jnp.maximum(1.0 - onehot, EPSILON)) * inv_tau
                return s, khot

            _, khot = _run_rounds(round_fn, (s, khot), k)

        khot_ref[pl.ds(r0, chunk_rows), :] = khot.astype(khot_ref.dtype)

    if num_chunks == 1:
        process_chunk(0)
    else:
        pl.loop(0, num_chunks)(process_chunk)


def _choose_chunk_rows(n: int, itemsize: int) -> int:
    # Keep each chunk temporary around <= 4K elements (~4 vregs) so the ~5 live
    # f32 temporaries of a round stay in vregs when n is narrow; floor at the
    # dtype's sublane packing multiple.
    sub = {4: 8, 2: 16, 1: 32}.get(itemsize, 8)
    return max(sub, min(32, _round_down(max(4096 // max(n, 1), 1), sub)))


def _choose_block_rows(b: int, n: int, chunk_rows: int, in_item: int,
                       out_item: int, vmem_budget: int,
                       block_b: int | None) -> int:
    if block_b is not None:
        return max(chunk_rows, _round_up(int(block_b), chunk_rows))
    row_bytes = n * (in_item + out_item)
    # Double-buffered in + out blocks must fit under the budget with headroom.
    tb = min(_MAX_BLOCK_ROWS,
             max(chunk_rows, (vmem_budget - _VMEM_HEADROOM) // (2 * row_bytes)))
    # Prefer >= _TARGET_GRID_STEPS grid steps when the batch allows it.
    if b >= _TARGET_GRID_STEPS * chunk_rows:
        tb = min(tb, max(chunk_rows, pl.cdiv(b, _TARGET_GRID_STEPS)))
    tb = max(chunk_rows, _round_down(tb, chunk_rows))
    # Never bigger than needed to cover the batch in one block.
    return min(tb, _round_up(b, chunk_rows))


def subset_operator(scores: jax.Array, k: int, tau: float = 1.0,
                    hard: bool = False, *, block_b: int | None = None) -> jax.Array:
    """Pallas implementation of SubsetOperator.forward (hard=False path)."""
    if hard:
        # TODO(synk): the reference `hard` branch calls index_fill_ with a 2-D
        # index tensor (buggy as written upstream); the straight-through hard
        # top-k scatter is not reproduced here.
        raise NotImplementedError("hard=True path not implemented")
    if scores.ndim != 2:
        raise ValueError("expected (batch, n) scores")
    if not jnp.issubdtype(scores.dtype, jnp.floating):
        scores = scores.astype(jnp.float32)

    b, n = scores.shape
    k = int(k)
    tau = float(tau)
    in_dtype = scores.dtype
    in_item = jnp.dtype(in_dtype).itemsize
    out_item = in_item                       # native-dtype output (bf16 -> bf16)

    vmem_budget = _vmem_budget_bytes()
    chunk_rows = _choose_chunk_rows(n, in_item)
    block_rows = _choose_block_rows(b, n, chunk_rows, in_item, out_item,
                                    vmem_budget, block_b)
    num_chunks = block_rows // chunk_rows
    grid = (pl.cdiv(b, block_rows),)         # ragged last block handled by Pallas

    tau_is_one = (tau == 1.0)
    kernel = functools.partial(
        _subset_kernel, k=k, inv_tau=1.0 / tau, tau_is_one=tau_is_one,
        chunk_rows=chunk_rows, num_chunks=num_chunks)

    elems = b * n
    cost = pl.CostEstimate(
        flops=int(8 * k * elems),
        transcendentals=int(elems if tau_is_one else 2 * k * elems),
        bytes_accessed=int(elems * (in_item + out_item)))

    vmem_limit = int(min(vmem_budget,
                         max(16 * 1024 * 1024,
                             2 * block_rows * n * (in_item + out_item)
                             + _VMEM_HEADROOM)))

    return pl.pallas_call(
        kernel,
        out_shape=jax.ShapeDtypeStruct((b, n), in_dtype),
        grid_spec=pltpu.PrefetchScalarGridSpec(
            num_scalar_prefetch=0,
            grid=grid,
            in_specs=[pl.BlockSpec((block_rows, n), lambda i: (i, 0))],
            out_specs=pl.BlockSpec((block_rows, n), lambda i: (i, 0)),
        ),
        compiler_params=pltpu.CompilerParams(
            dimension_semantics=("parallel",),
            vmem_limit_bytes=vmem_limit),
        cost_estimate=cost,
    )(scores)


def subset_operator_ref(scores: jax.Array, k: int, tau: float = 1.0) -> jax.Array:
    """Pure-JAX reference (matches the PyTorch forward for hard=False)."""
    s = scores.astype(jnp.float32)
    onehot = jnp.zeros_like(s)
    khot = jnp.zeros_like(s)
    for _ in range(k):
        mask = jnp.maximum(1.0 - onehot, EPSILON)
        s = s + jnp.log(mask)
        onehot = jax.nn.softmax(s / tau, axis=1)
        khot = khot + onehot
    return khot


if __name__ == "__main__":
    key = jax.random.PRNGKey(0)
    B, N, K = 10, 96, 4          # ragged batch tile + non-128 lane width
    scores = jax.random.normal(key, (B, N), dtype=jnp.float32)

    # tau == 1.0 fast path (single exp pass)
    out = jax.block_until_ready(subset_operator(scores, k=K, tau=1.0))
    ref = subset_operator_ref(scores, k=K, tau=1.0)
    np.testing.assert_allclose(np.asarray(out), np.asarray(ref), rtol=2e-5, atol=2e-5)
    # Each row of khot sums to k (sum of k softmax distributions).
    np.testing.assert_allclose(np.asarray(out).sum(axis=1),
                               np.full((B,), float(K)), rtol=1e-4)

    # general-tau path (faithful per-round masked softmax)
    out2 = jax.block_until_ready(subset_operator(scores, k=K, tau=0.7))
    ref2 = subset_operator_ref(scores, k=K, tau=0.7)
    np.testing.assert_allclose(np.asarray(out2), np.asarray(ref2), rtol=2e-5, atol=2e-5)

    # native bf16 I/O path (no wrapper casts; f32 math inside the kernel)
    scores_bf16 = scores.astype(jnp.bfloat16)
    out3 = jax.block_until_ready(subset_operator(scores_bf16, k=K, tau=1.0))
    ref3 = subset_operator_ref(scores_bf16.astype(jnp.float32), k=K, tau=1.0)
    np.testing.assert_allclose(np.asarray(out3, dtype=np.float32),
                               np.asarray(ref3), rtol=1e-2, atol=1e-2)

    print("KERNEL_OK")
</pallas_src>

<mosaic_0001>
module attributes {stable_mosaic.version = 11 : i64} {
  func.func @_subset_kernel(%arg0: i32, %arg1: memref<32x96xf32, #tpu.memory_space<vmem>>, %arg2: memref<32x96xf32, #tpu.memory_space<vmem>>) attributes {dimension_semantics = [#tpu.dimension_semantics<parallel>], iteration_bounds = array<i64: 1>, scalar_prefetch = 0 : i64, scratch_operands = 0 : i64, tpu.core_type = #tpu.core_type<tc>, window_params = [{transform_indices = @transform_0, window_bounds = array<i64: 32, 96>}, {transform_indices = @transform_1, window_bounds = array<i64: 32, 96>}]} {
    %c0 = arith.constant 0 : index
    %c0_0 = arith.constant 0 : index
    %0 = vector.load %arg1[%c0, %c0_0] : memref<32x96xf32, #tpu.memory_space<vmem>>, vector<32x96xf32>
    %cst = arith.constant dense<0xFF800000> : vector<32xf32>
    %1 = vector.multi_reduction <maximumf>, %0, %cst [1] : vector<32x96xf32> to vector<32xf32>
    %2 = vector.shape_cast %1 : vector<32xf32> to vector<32x1xf32>
    %3 = vector.broadcast %2 : vector<32x1xf32> to vector<32x96xf32>
    %4 = arith.subf %0, %3 : vector<32x96xf32>
    %5 = math.exp %4 : vector<32x96xf32>
    %cst_1 = arith.constant 0.000000e+00 : f32
    %6 = vector.broadcast %cst_1 : f32 to vector<32x96xf32>
    %cst_2 = arith.constant dense<0.000000e+00> : vector<32xf32>
    %7 = vector.multi_reduction <add>, %5, %cst_2 [1] : vector<32x96xf32> to vector<32xf32>
    %8 = vector.shape_cast %7 : vector<32xf32> to vector<32x1xf32>
    %9 = tpu.reciprocal %8 {approx = true} : vector<32x1xf32> -> vector<32x1xf32>
    %10 = arith.mulf %8, %9 : vector<32x1xf32>
    %cst_3 = arith.constant 2.000000e+00 : f32
    %11 = vector.broadcast %cst_3 : f32 to vector<32x1xf32>
    %12 = arith.subf %11, %10 : vector<32x1xf32>
    %13 = arith.mulf %9, %12 : vector<32x1xf32>
    %14 = vector.broadcast %13 : vector<32x1xf32> to vector<32x96xf32>
    %15 = arith.mulf %5, %14 : vector<32x96xf32>
    %16 = arith.addf %6, %15 : vector<32x96xf32>
    %cst_4 = arith.constant 1.000000e+00 : f32
    %17 = vector.broadcast %cst_4 : f32 to vector<32x96xf32>
    %18 = arith.subf %17, %15 : vector<32x96xf32>
    %cst_5 = arith.constant 1.17549435E-38 : f32
    %19 = vector.broadcast %cst_5 : f32 to vector<32x96xf32>
    %20 = arith.maximumf %18, %19 : vector<32x96xf32>
    %21 = arith.mulf %15, %20 : vector<32x96xf32>
    %cst_6 = arith.constant dense<0.000000e+00> : vector<32xf32>
    %22 = vector.multi_reduction <add>, %21, %cst_6 [1] : vector<32x96xf32> to vector<32xf32>
    %23 = vector.shape_cast %22 : vector<32xf32> to vector<32x1xf32>
    %24 = tpu.reciprocal %23 {approx = true} : vector<32x1xf32> -> vector<32x1xf32>
    %25 = arith.mulf %23, %24 : vector<32x1xf32>
    %cst_7 = arith.constant 2.000000e+00 : f32
    %26 = vector.broadcast %cst_7 : f32 to vector<32x1xf32>
    %27 = arith.subf %26, %25 : vector<32x1xf32>
    %28 = arith.mulf %24, %27 : vector<32x1xf32>
    %29 = vector.broadcast %28 : vector<32x1xf32> to vector<32x96xf32>
    %30 = arith.mulf %21, %29 : vector<32x96xf32>
    %31 = arith.addf %16, %30 : vector<32x96xf32>
    %cst_8 = arith.constant 1.000000e+00 : f32
    %32 = vector.broadcast %cst_8 : f32 to vector<32x96xf32>
    %33 = arith.subf %32, %30 : vector<32x96xf32>
    %cst_9 = arith.constant 1.17549435E-38 : f32
    %34 = vector.broadcast %cst_9 : f32 to vector<32x96xf32>
    %35 = arith.maximumf %33, %34 : vector<32x96xf32>
    %36 = arith.mulf %30, %35 : vector<32x96xf32>
    %cst_10 = arith.constant dense<0.000000e+00> : vector<32xf32>
    %37 = vector.multi_reduction <add>, %36, %cst_10 [1] : vector<32x96xf32> to vector<32xf32>
    %38 = vector.shape_cast %37 : vector<32xf32> to vector<32x1xf32>
    %39 = tpu.reciprocal %38 {approx = true} : vector<32x1xf32> -> vector<32x1xf32>
    %40 = arith.mulf %38, %39 : vector<32x1xf32>
    %cst_11 = arith.constant 2.000000e+00 : f32
    %41 = vector.broadcast %cst_11 : f32 to vector<32x1xf32>
    %42 = arith.subf %41, %40 : vector<32x1xf32>
    %43 = arith.mulf %39, %42 : vector<32x1xf32>
    %44 = vector.broadcast %43 : vector<32x1xf32> to vector<32x96xf32>
    %45 = arith.mulf %36, %44 : vector<32x96xf32>
    %46 = arith.addf %31, %45 : vector<32x96xf32>
    %cst_12 = arith.constant 1.000000e+00 : f32
    %47 = vector.broadcast %cst_12 : f32 to vector<32x96xf32>
    %48 = arith.subf %47, %45 : vector<32x96xf32>
    %cst_13 = arith.constant 1.17549435E-38 : f32
    %49 = vector.broadcast %cst_13 : f32 to vector<32x96xf32>
    %50 = arith.maximumf %48, %49 : vector<32x96xf32>
    %51 = arith.mulf %45, %50 : vector<32x96xf32>
    %cst_14 = arith.constant dense<0.000000e+00> : vector<32xf32>
    %52 = vector.multi_reduction <add>, %51, %cst_14 [1] : vector<32x96xf32> to vector<32xf32>
    %53 = vector.shape_cast %52 : vector<32xf32> to vector<32x1xf32>
    %54 = tpu.reciprocal %53 {approx = true} : vector<32x1xf32> -> vector<32x1xf32>
    %55 = arith.mulf %53, %54 : vector<32x1xf32>
    %cst_15 = arith.constant 2.000000e+00 : f32
    %56 = vector.broadcast %cst_15 : f32 to vector<32x1xf32>
    %57 = arith.subf %56, %55 : vector<32x1xf32>
    %58 = arith.mulf %54, %57 : vector<32x1xf32>
    %59 = vector.broadcast %58 : vector<32x1xf32> to vector<32x96xf32>
    %60 = arith.mulf %51, %59 : vector<32x96xf32>
    %61 = arith.addf %46, %60 : vector<32x96xf32>
    %c0_16 = arith.constant 0 : index
    %c0_17 = arith.constant 0 : index
    %62 = vector.load %arg2[%c0_16, %c0_17] : memref<32x96xf32, #tpu.memory_space<vmem>>, vector<32x96xf32>
    tpu.vector_store %arg2[%c0_16, %c0_17], %61 {strides = array<i32>} : memref<32x96xf32, #tpu.memory_space<vmem>>, vector<32x96xf32>,
    return
  }
  func.func @transform_0(%arg0: i32) -> (i32, i32) {
    %c0_i32 = arith.constant 0 : i32
    %c0_i32_0 = arith.constant 0 : i32
    return %arg0, %c0_i32 : i32, i32
  }
  func.func @transform_1(%arg0: i32) -> (i32, i32) {
    %c0_i32 = arith.constant 0 : i32
    %c0_i32_0 = arith.constant 0 : i32
    return %arg0, %c0_i32 : i32, i32
  }
}

</mosaic_0001>

<bundles_post_ra>
// kernel: tpu_custom_call.1
= control target key start
LH: loop header
LB: loop body
LE: loop exit
PB: predicated region body
PF: predicated region fallthrough
CT: control target
= control target key end

     0   :  { %6 = vsyncpa [#allocation3], 0  ;;  %s411_s0 = inlined_call_operand.hbm [shape: f32[10,96], index: 0, kind: input, shape index: {}]   ;;  %s412_s1 = inlined_call_operand.hbm [shape: f32[10,96], index: 1, kind: output, shape index: {}]  }
   0x1   :  { %7 = vsyncpa [#allocation4], 0 }
   0x2   :  { %12 = vsyncadd [#allocation3], 256  ;;  %s341_s6 = smov [#allocation2]  }
   0x3   :  { %s13_s7 = sshll.u32 %s341_s6, 4  ;;  %s14_s7 = int_to_ptr.vmem [resolvable:$true] %s13_s7 }
   0x4   :  { %s305_s8 = scalar_lea.vmem %s14_s7, 256  ;;  %s309_s9 = scalar_lea.vmem %s14_s7, 512 }
   0x5   :  { %p306_p0 = scmp.ne.s32.totalorder %s14_s7, %s305_s8  ;;  %p310_p1 = scmp.lt.s32.totalorder %s14_s7, %s14_s7 }
   0x6   :  { %p311_p2 = scmp.lt.s32.totalorder %s309_s9, %s305_s8 }
   0x8   :  { %p312_p3 = por %p311_p2, %p310_p1 }
   0xa   :  { %p313_p4 = pnand %p312_p3, %p306_p0 }
   0xc   :  { %316 = shalt.err (!%p313_p4)
}
   0xd   :  { %s342_s10 = smov 128   ;;  %s343_s11 = smov 8  }
   0xe   :  { %19 = dma.hbm_to_vmem [thread:$0]  %s411_s0, 256, %s14_s7, [#allocation3], %s342_s10, %s342_s10, %s343_s11  }
   0xf   :  { %337 = dma.done.wait [#allocation3], 512  }
  0x10   :  { %338 = vsyncadd [#allocation3], 4294966784  ;;  %vm27_vm0 = vcmask 785408   ;;  %v23_v0 = vld [vmem:[#allocation2] sm:$0xff]  ;;  %v25_v1 = vld [vmem:[#allocation2 + $0x10] sm:$0xff] }
  0x11   :  { %v24_v2 = vld [vmem:[#allocation2 + $0x8] sm:$0xff]  ;;  %v28_v3 = vsel %vm27_vm0, %v23_v0, -inf  ;;  %v34_v4 = vsel %vm27_vm0, %v25_v1, -inf  ;;  %v26_v5 = vld [vmem:[#allocation2 + $0x18] sm:$0xff] }
  0x12   :  { %29 = vmax.xlane.f32.xlu0 %v28_v3  ;;  %35 = vmax.xlane.f32.xlu1 %v34_v4  ;;  %v31_v6 = vsel %vm27_vm0, %v24_v2, -inf  ;;  %v37_v7 = vsel %vm27_vm0, %v26_v5, -inf }
  0x16   :  { %32 = vmax.xlane.f32.xlu0 %v31_v6  ;;  %38 = vmax.xlane.f32.xlu1 %v37_v7 }
  0x9b   :  { %v30_v8 = vpop.xlane.xlu0 %29  ;;  %v36_v9 = vpop.xlane.xlu1 %35 }
  0x9c   :  { %v40_v10 = vsub.f32 %v23_v0, %v30_v8  ;;  %v42_v11 = vsub.f32 %v25_v1, %v36_v9 }
  0x9e   :  { %v44_v12 = vmul.f32 1.442695, %v40_v10  ;;  %v48_v13 = vmul.f32 1.442695, %v42_v11 }
  0x9f   :  { %v33_v14 = vpop.xlane.xlu0 %32  ;;  %v39_v15 = vpop.xlane.xlu1 %38 }
  0xa0   :  { %257 = vpow2.f32 %v44_v12  ;;  %v41_v16 = vsub.f32 %v24_v2, %v33_v14  ;;  %v43_v17 = vsub.f32 %v26_v5, %v39_v15 }
  0xa1   :  { %259 = vpow2.f32 %v48_v13 }
  0xa2   :  { %v46_v18 = vmul.f32 1.442695, %v41_v16  ;;  %v50_v19 = vmul.f32 1.442695, %v43_v17 }
  0xa4   :  { %261 = vpow2.f32 %v46_v18 }
  0xa5   :  { %263 = vpow2.f32 %v50_v19 }
  0xad   :  { %v258_v20 = vpop.eup %257 }
  0xae   :  { %v260_v21 = vpop.eup %259  ;;  %v52_v22 = vsel %vm27_vm0, %v258_v20, 0.0 }
  0xaf   :  { %53 = vadd.xlane.f32.xlu0 %v52_v22  ;;  %v58_v23 = vsel %vm27_vm0, %v260_v21, 0.0 }
  0xb1   :  { %v262_v24 = vpop.eup %261 }
  0xb2   :  { %v264_v25 = vpop.eup %263  ;;  %v55_v26 = vsel %vm27_vm0, %v262_v24, 0.0 }
  0xb3   :  { %59 = vadd.xlane.f32.xlu0 %v58_v23  ;;  %56 = vadd.xlane.f32.xlu1 %v55_v26  ;;  %v61_v27 = vsel %vm27_vm0, %v264_v25, 0.0 }
  0xb7   :  { %62 = vadd.xlane.f32.xlu1 %v61_v27 }
 0x138   :  { %v54_v28 = vpop.xlane.xlu0 %53 }
 0x139   :  { %265 = vrcp.f32 %v54_v28 }
 0x13c   :  { %v57_v29 = vpop.xlane.xlu1 %56  ;;  %v60_v30 = vpop.xlane.xlu0 %59 }
 0x13d   :  { %267 = vrcp.f32 %v57_v29 }
 0x13e   :  { %269 = vrcp.f32 %v60_v30 }
 0x140   :  { %v63_v31 = vpop.xlane.xlu1 %62 }
 0x141   :  { %271 = vrcp.f32 %v63_v31 }
 0x146   :  { %v266_v32 = vpop.eup %265 }
 0x147   :  { %v68_v33 = vmul.f32 %v266_v32, %v54_v28 }
 0x149   :  { %v72_v34 = vsub.f32 2.0, %v68_v33 }
 0x14a   :  { %v268_v35 = vpop.eup %267 }
 0x14b   :  { %v270_v36 = vpop.eup %269  ;;  %v76_v37 = vmul.f32 %v266_v32, %v72_v34  ;;  %v69_v38 = vmul.f32 %v268_v35, %v57_v29 }
 0x14c   :  { %v70_v39 = vmul.f32 %v270_v36, %v60_v30 }
 0x14d   :  { %v369_v40 = vmul.f32 %v258_v20, %v76_v37  ;;  %v73_v41 = vsub.f32 2.0, %v69_v38 }
 0x14e   :  { %v272_v42 = vpop.eup %271  ;;  %v74_v43 = vsub.f32 2.0, %v70_v39 }
 0x14f   :  { %v77_v44 = vmul.f32 %v268_v35, %v73_v41  ;;  %v71_v45 = vmul.f32 %v272_v42, %v63_v31  ;;  %v88_v46 = vsub.f32 1.0, %v369_v40 }
 0x150   :  { %v78_v47 = vmul.f32 %v270_v36, %v74_v43 }
 0x151   :  { %v372_v48 = vmul.f32 %v262_v24, %v77_v44  ;;  %v75_v49 = vsub.f32 2.0, %v71_v45  ;;  %v92_v50 = vmax.f32 %v88_v46, 1.1754944e-38 }
 0x152   :  { %v374_v51 = vmul.f32 %v260_v21, %v78_v47 }
 0x153   :  { %v79_v52 = vmul.f32 %v272_v42, %v75_v49  ;;  %v96_v53 = vmul.f32 %v92_v50, %v369_v40  ;;  %v89_v54 = vsub.f32 1.0, %v372_v48 }
 0x154   :  { %v90_v55 = vsub.f32 1.0, %v374_v51 }
 0x155   :  { %v379_v56 = vmul.f32 %v264_v25, %v79_v52  ;;  %v100_v57 = vsel %vm27_vm0, %v96_v53, 0.0  ;;  %v93_v58 = vmax.f32 %v89_v54, 1.1754944e-38 }
 0x156   :  { %101 = vadd.xlane.f32.xlu0 %v100_v57  ;;  %v94_v59 = vmax.f32 %v90_v55, 1.1754944e-38 }
 0x157   :  { %v97_v60 = vmul.f32 %v93_v58, %v372_v48  ;;  %v91_v61 = vsub.f32 1.0, %v379_v56 }
 0x158   :  { %v98_v62 = vmul.f32 %v94_v59, %v374_v51 }
 0x159   :  { %v103_v63 = vsel %vm27_vm0, %v97_v60, 0.0  ;;  %v95_v0 = vmax.f32 %v91_v61, 1.1754944e-38 }
 0x15a   :  { %104 = vadd.xlane.f32.xlu1 %v103_v63  ;;  %v106_v1 = vsel %vm27_vm0, %v98_v62, 0.0 }
 0x15b   :  { %107 = vadd.xlane.f32.xlu0 %v106_v1  ;;  %v99_v2 = vmul.f32 %v95_v0, %v379_v56 }
 0x15d   :  { %v109_v3 = vsel %vm27_vm0, %v99_v2, 0.0 }
 0x15e   :  { %110 = vadd.xlane.f32.xlu1 %v109_v3 }
 0x1df   :  { %v102_v4 = vpop.xlane.xlu0 %101 }
 0x1e0   :  { %273 = vrcp.f32 %v102_v4 }
 0x1e3   :  { %v105_v5 = vpop.xlane.xlu1 %104 }
 0x1e4   :  { %275 = vrcp.f32 %v105_v5  ;;  %v108_v6 = vpop.xlane.xlu0 %107 }
 0x1e5   :  { %277 = vrcp.f32 %v108_v6 }
 0x1e7   :  { %v111_v7 = vpop.xlane.xlu1 %110 }
 0x1e8   :  { %279 = vrcp.f32 %v111_v7 }
 0x1ed   :  { %v274_v8 = vpop.eup %273 }
 0x1ee   :  { %v116_v9 = vmul.f32 %v274_v8, %v102_v4 }
 0x1f0   :  { %v120_v10 = vsub.f32 2.0, %v116_v9 }
 0x1f1   :  { %v276_v11 = vpop.eup %275 }
 0x1f2   :  { %v278_v12 = vpop.eup %277  ;;  %v124_v13 = vmul.f32 %v274_v8, %v120_v10  ;;  %v117_v14 = vmul.f32 %v276_v11, %v105_v5 }
 0x1f3   :  { %v118_v15 = vmul.f32 %v278_v12, %v108_v6 }
 0x1f4   :  { %v128_v16 = vmul.f32 %v124_v13, %v96_v53  ;;  %v121_v17 = vsub.f32 2.0, %v117_v14 }
 0x1f5   :  { %v280_v18 = vpop.eup %279  ;;  %v122_v19 = vsub.f32 2.0, %v118_v15 }
 0x1f6   :  { %v125_v20 = vmul.f32 %v276_v11, %v121_v17  ;;  %v119_v21 = vmul.f32 %v280_v18, %v111_v7  ;;  %v136_v22 = vsub.f32 1.0, %v128_v16 }
 0x1f7   :  { %v126_v23 = vmul.f32 %v278_v12, %v122_v19 }
 0x1f8   :  { %v129_v24 = vmul.f32 %v125_v20, %v97_v60  ;;  %v123_v25 = vsub.f32 2.0, %v119_v21  ;;  %v140_v26 = vmax.f32 %v136_v22, 1.1754944e-38  ;;  %v132_v60 = vadd.f32 %v128_v16, %v369_v40 }
 0x1f9   :  { %v130_v27 = vmul.f32 %v126_v23, %v98_v62 }
 0x1fa   :  { %v127_v28 = vmul.f32 %v280_v18, %v123_v25  ;;  %v144_v29 = vmul.f32 %v140_v26, %v128_v16  ;;  %v137_v30 = vsub.f32 1.0, %v129_v24  ;;  %v133_v6 = vadd.f32 %v129_v24, %v372_v48 }
 0x1fb   :  { %v138_v31 = vsub.f32 1.0, %v130_v27  ;;  %v134_v10 = vadd.f32 %v130_v27, %v374_v51 }
 0x1fc   :  { %v131_v32 = vmul.f32 %v127_v28, %v99_v2  ;;  %v148_v33 = vsel %vm27_vm0, %v144_v29, 0.0  ;;  %v141_v34 = vmax.f32 %v137_v30, 1.1754944e-38 }
 0x1fd   :  { %149 = vadd.xlane.f32.xlu0 %v148_v33  ;;  %v142_v35 = vmax.f32 %v138_v31, 1.1754944e-38 }
 0x1fe   :  { %v145_v36 = vmul.f32 %v141_v34, %v129_v24  ;;  %v139_v37 = vsub.f32 1.0, %v131_v32  ;;  %v135_v17 = vadd.f32 %v131_v32, %v379_v56 }
 0x1ff   :  { %v146_v38 = vmul.f32 %v142_v35, %v130_v27 }
 0x200   :  { %v151_v39 = vsel %vm27_vm0, %v145_v36, 0.0  ;;  %v143_v41 = vmax.f32 %v139_v37, 1.1754944e-38 }
 0x201   :  { %152 = vadd.xlane.f32.xlu1 %v151_v39  ;;  %v154_v42 = vsel %vm27_vm0, %v146_v38, 0.0 }
 0x202   :  { %155 = vadd.xlane.f32.xlu0 %v154_v42  ;;  %v147_v43 = vmul.f32 %v143_v41, %v131_v32 }
 0x204   :  { %v157_v44 = vsel %vm27_vm0, %v147_v43, 0.0 }
 0x205   :  { %158 = vadd.xlane.f32.xlu1 %v157_v44 }
 0x286   :  { %v150_v45 = vpop.xlane.xlu0 %149 }
 0x287   :  { %281 = vrcp.f32 %v150_v45 }
 0x28a   :  { %v153_v46 = vpop.xlane.xlu1 %152 }
 0x28b   :  { %283 = vrcp.f32 %v153_v46  ;;  %v156_v47 = vpop.xlane.xlu0 %155 }
 0x28c   :  { %285 = vrcp.f32 %v156_v47 }
 0x28e   :  { %v159_v49 = vpop.xlane.xlu1 %158 }
 0x28f   :  { %287 = vrcp.f32 %v159_v49 }
 0x294   :  { %v282_v50 = vpop.eup %281 }
 0x295   :  { %v164_v52 = vmul.f32 %v282_v50, %v150_v45 }
 0x297   :  { %v168_v53 = vsub.f32 2.0, %v164_v52 }
 0x298   :  { %v284_v54 = vpop.eup %283 }
 0x299   :  { %v286_v55 = vpop.eup %285  ;;  %v172_v57 = vmul.f32 %v282_v50, %v168_v53  ;;  %v165_v58 = vmul.f32 %v284_v54, %v153_v46 }
 0x29a   :  { %v166_v59 = vmul.f32 %v286_v55, %v156_v47 }
 0x29b   :  { %v176_v61 = vmul.f32 %v172_v57, %v144_v29  ;;  %v169_v62 = vsub.f32 2.0, %v165_v58 }
 0x29c   :  { %v288_v63 = vpop.eup %287  ;;  %v170_v0 = vsub.f32 2.0, %v166_v59 }
 0x29d   :  { %v173_v1 = vmul.f32 %v284_v54, %v169_v62  ;;  %v167_v2 = vmul.f32 %v288_v63, %v159_v49  ;;  %v184_v3 = vsub.f32 1.0, %v176_v61  ;;  %v180_v4 = vadd.f32 %v176_v61, %v132_v60 }
 0x29e   :  { %v174_v5 = vmul.f32 %v286_v55, %v170_v0 }
 0x29f   :  { %v177_v7 = vmul.f32 %v173_v1, %v145_v36  ;;  %v171_v8 = vsub.f32 2.0, %v167_v2  ;;  %v188_v9 = vmax.f32 %v184_v3, 1.1754944e-38 }
 0x2a0   :  { %v178_v11 = vmul.f32 %v174_v5, %v146_v38 }
 0x2a1   :  { %v175_v12 = vmul.f32 %v288_v63, %v171_v8  ;;  %v192_v13 = vmul.f32 %v188_v9, %v176_v61  ;;  %v185_v40 = vsub.f32 1.0, %v177_v7  ;;  %v181_v14 = vadd.f32 %v177_v7, %v133_v6 }
 0x2a2   :  { %v186_v15 = vsub.f32 1.0, %v178_v11  ;;  %v182_v16 = vadd.f32 %v178_v11, %v134_v10 }
 0x2a3   :  { %v179_v18 = vmul.f32 %v175_v12, %v147_v43  ;;  %v196_v19 = vsel %vm27_vm0, %v192_v13, 0.0  ;;  %v189_v20 = vmax.f32 %v185_v40, 1.1754944e-38 }
 0x2a4   :  { %197 = vadd.xlane.f32.xlu0 %v196_v19  ;;  %v190_v48 = vmax.f32 %v186_v15, 1.1754944e-38 }
 0x2a5   :  { %v193_v21 = vmul.f32 %v189_v20, %v177_v7  ;;  %v187_v22 = vsub.f32 1.0, %v179_v18  ;;  %v183_v23 = vadd.f32 %v179_v18, %v135_v17 }
 0x2a6   :  { %v194_v24 = vmul.f32 %v190_v48, %v178_v11 }
 0x2a7   :  { %v199_v51 = vsel %vm27_vm0, %v193_v21, 0.0  ;;  %v191_v25 = vmax.f32 %v187_v22, 1.1754944e-38 }
 0x2a8   :  { %200 = vadd.xlane.f32.xlu1 %v199_v51  ;;  %v202_v26 = vsel %vm27_vm0, %v194_v24, 0.0 }
 0x2a9   :  { %203 = vadd.xlane.f32.xlu0 %v202_v26  ;;  %v195_v27 = vmul.f32 %v191_v25, %v179_v18 }
 0x2ab   :  { %v205_v56 = vsel %vm27_vm0, %v195_v27, 0.0 }
 0x2ac   :  { %206 = vadd.xlane.f32.xlu1 %v205_v56 }
 0x32d   :  { %v198_v28 = vpop.xlane.xlu0 %197 }
 0x32e   :  { %289 = vrcp.f32 %v198_v28 }
 0x331   :  { %v201_v29 = vpop.xlane.xlu1 %200 }
 0x332   :  { %291 = vrcp.f32 %v201_v29  ;;  %v204_v30 = vpop.xlane.xlu0 %203 }
 0x333   :  { %293 = vrcp.f32 %v204_v30 }
 0x335   :  { %v207_v31 = vpop.xlane.xlu1 %206 }
 0x336   :  { %295 = vrcp.f32 %v207_v31 }
 0x33b   :  { %v290_v32 = vpop.eup %289 }
 0x33c   :  { %v212_v33 = vmul.f32 %v290_v32, %v198_v28 }
 0x33e   :  { %v216_v34 = vsub.f32 2.0, %v212_v33 }
 0x33f   :  { %v292_v35 = vpop.eup %291 }
 0x340   :  { %v294_v36 = vpop.eup %293  ;;  %v220_v37 = vmul.f32 %v290_v32, %v216_v34  ;;  %v213_v38 = vmul.f32 %v292_v35, %v201_v29 }
 0x341   :  { %v214_v39 = vmul.f32 %v294_v36, %v204_v30 }
 0x342   :  { %v224_v41 = vmul.f32 %v220_v37, %v192_v13  ;;  %v217_v42 = vsub.f32 2.0, %v213_v38 }
 0x343   :  { %v296_v43 = vpop.eup %295  ;;  %v218_v44 = vsub.f32 2.0, %v214_v39 }
 0x344   :  { %v228_v45 = vadd.f32 %v224_v41, %v180_v4  ;;  %v221_v46 = vmul.f32 %v292_v35, %v217_v42  ;;  %v215_v47 = vmul.f32 %v296_v43, %v207_v31 }
 0x345   :  { %v222_v49 = vmul.f32 %v294_v36, %v218_v44 }
 0x346   :  { %232 = vst.msk [vmem:[#allocation5] sm:$0xff] %vm27_vm0, %v228_v45  ;;  %v225_v50 = vmul.f32 %v221_v46, %v193_v21  ;;  %v219_v52 = vsub.f32 2.0, %v215_v47 }
 0x347   :  { %v226_v53 = vmul.f32 %v222_v49, %v194_v24 }
 0x348   :  { %v229_v54 = vadd.f32 %v225_v50, %v181_v14  ;;  %v223_v55 = vmul.f32 %v296_v43, %v219_v52 }
 0x349   :  { %v230_v57 = vadd.f32 %v226_v53, %v182_v16 }
 0x34a   :  { %233 = vst.msk [vmem:[#allocation5 + $0x8] sm:$0xff] %vm27_vm0, %v229_v54  ;;  %v227_v58 = vmul.f32 %v223_v55, %v195_v27 }
 0x34b   :  { %234 = vst.msk [vmem:[#allocation5 + $0x10] sm:$0xff] %vm27_vm0, %v230_v57 }
 0x34c   :  { %v231_v59 = vadd.f32 %v227_v58, %v183_v23 }
 0x34e   :  { %235 = vst.msk [vmem:[#allocation5 + $0x18] sm:$0xff] %vm27_vm0, %v231_v59 }
 0x34f   :  { %240 = vsyncadd [#allocation4], 256  ;;  %s344_s0 = smov [#allocation5]  }
 0x350   :  { %s241_s14 = sshll.u32 %s344_s0, 4  ;;  %s242_s14 = int_to_ptr.vmem [resolvable:$true] %s241_s14 }
 0x351   :  { %s317_s15 = scalar_lea.vmem %s242_s14, 256  ;;  %s321_s16 = scalar_lea.vmem %s242_s14, 512 }
 0x352   :  { %p318_p5 = scmp.ne.s32.totalorder %s242_s14, %s317_s15  ;;  %p322_p6 = scmp.lt.s32.totalorder %s242_s14, %s242_s14 }
 0x353   :  { %p323_p7 = scmp.lt.s32.totalorder %s321_s16, %s317_s15 }
 0x355   :  { %p324_p8 = por %p323_p7, %p322_p6 }
 0x357   :  { %p325_p9 = pnand %p324_p8, %p318_p5 }
 0x359   :  { %328 = shalt.err (!%p325_p9)
}
 0x35a   :  { %247 = dma.vmem_to_hbm [thread:$0]  %s242_s14, 256, %s412_s1, [#allocation4], %s342_s10, %s342_s10, %s343_s11  }
 0x35b   :  { %339 = dma.done.wait [#allocation4], 512  }
 0x35c   :  { %340 = vsyncadd [#allocation4], 4294966784 }
 0x35d   :  { %251 = vsyncpa [#allocation3], 1 }
 0x35e   :  { %252 = vsyncpa [#allocation4], 1 }

</bundles_post_ra>
